<compile_context>
chip_gen: v7x
topology: tpu7x:2x2x1
jax: 0.10.0
libtpu: 0.0.40
codegen_flags: <defaults>
</compile_context>

<pallas_src>
import functools

import jax
import jax.numpy as jnp
from jax.experimental import pallas as pl
from jax.experimental.pallas import tpu as pltpu


def _channel_attn_kernel(x_ref, w1t_ref, b1_ref, w2t_ref, b2_ref, o_ref, *,
                         inv_hw):
    """Fused squeeze-excite on one (Nb, C, HW) block.

    x_ref/o_ref: (Nb, C, HW); w1t: (C, Cr); b1: (1, Cr); w2t: (Cr, C); b2: (1, C)
    """
    x = x_ref[...]                                              # streaming dtype

    # Global average pool, accumulated in f32. The lane reduction respects the
    # logical HW extent (VMEM lane padding is masked), so no zero padding is
    # needed; dividing by the true H*W gives the exact mean.
    pooled = jnp.sum(x.astype(jnp.float32), axis=2) * inv_hw    # (Nb, C) f32

    # Batched 1x1-conv channel MLP (tiny next to the HBM streaming), all in f32,
    # two matmuls for the whole block instead of 2*Nb mat-vecs.
    w1t = w1t_ref[...].astype(jnp.float32)                      # (C, Cr)
    b1 = b1_ref[...].astype(jnp.float32)                        # (1, Cr)
    w2t = w2t_ref[...].astype(jnp.float32)                      # (Cr, C)
    b2 = b2_ref[...].astype(jnp.float32)                        # (1, C)

    y1 = jnp.dot(pooled, w1t, preferred_element_type=jnp.float32) + b1
    y1 = jnp.maximum(y1, 0.0)                                   # (Nb, Cr)
    y2 = jnp.dot(y1, w2t, preferred_element_type=jnp.float32) + b2
    y2 = jax.nn.sigmoid(y2)                                     # (Nb, C)

    # Scale each channel; multiply/store stay in the streaming dtype so bf16
    # inputs use half the vregs / store ops on v6e / v7x.
    o_ref[...] = x * y2.astype(o_ref.dtype)[:, :, None]


def _tpu_geometry():
    """Returns (per-core VMEM bytes, TensorCores per chip) with safe fallbacks."""
    kind = ""
    try:
        kind = jax.devices()[0].device_kind.lower()
    except Exception:
        pass
    vmem = None
    try:
        vmem = int(pltpu.get_tpu_info().vmem_capacity_bytes)
    except Exception:
        vmem = None
    if not vmem or vmem <= 0:
        # v7x has the smallest per-core VMEM (64 MiB); v5e/v6e have 128 MiB.
        vmem = (64 << 20) if "v7" in kind else (128 << 20)
    n_cores = 2 if "v7" in kind else 1
    return vmem, n_cores


def _round_up(v, m):
    return ((v + m - 1) // m) * m


def channel_attn(x_nchw, w1, b1, w2, b2):
    """ChannelAttn forward. x_nchw: (N, C, H, W) -> (N, C, H, W), same dtype.

    w1: (C//r, C), b1: (C//r,), w2: (C, C//r), b2: (C,)  (1x1 conv weights).
    Pass x as bfloat16 to halve HBM traffic; pooling / MLP math is always f32.
    """
    N, C, H, W = x_nchw.shape
    HW = H * W
    Cr = w1.shape[0]
    itemsize = jnp.dtype(x_nchw.dtype).itemsize

    # No spatial padding: reshape is a bitcast, and the block's last dim is the
    # full HW extent, so x streams through HBM exactly once each direction.
    x = x_nchw.reshape(N, C, HW)

    w1t = jnp.asarray(w1).T.reshape(C, Cr)
    w2t = jnp.asarray(w2).T.reshape(Cr, C)
    b1r = jnp.asarray(b1).reshape(1, Cr)
    b2r = jnp.asarray(b2).reshape(1, C)

    # ---- block sizing: how many samples per grid step -----------------------
    vmem_phys, n_cores = _tpu_geometry()
    budget = max(32 << 20, vmem_phys * 3 // 4)

    # VMEM footprint of one sample's tile (lane dim padded to 128 lanes,
    # sublane dim padded to the dtype's packed sublane multiple).
    sublane = max(8, 32 // max(1, itemsize))
    per_sample_vmem = _round_up(C, sublane) * _round_up(HW, 128) * itemsize

    # Target multi-MiB blocks (amortize ~0.35 us/step), bounded so that the
    # double-buffered input + output blocks fit in the VMEM budget.
    target_block = 4 << 20
    max_nb_budget = max(1, budget // (4 * per_sample_vmem))
    max_nb_target = max(1, target_block // per_sample_vmem)
    nb_cap = min(max_nb_budget, max_nb_target)
    if n_cores >= 2 and N >= 2:
        # Keep >= 1 grid step per TensorCore only on 2-core chips (v7x);
        # on single-TC v5e/v6e splitting the grid just shrinks blocks.
        nb_cap = min(nb_cap, max(1, N // n_cores))
    nb_cap = max(1, min(nb_cap, N))

    Nb = 1
    for d in range(1, nb_cap + 1):
        if N % d == 0:
            Nb = d

    # ---- VMEM limit accounting ----------------------------------------------
    block_vmem = Nb * per_sample_vmem
    param_vmem = (C * Cr * 2 + Cr + C) * 4
    # A sub-32-bit block may get an f32 upcast materialized for the pooling
    # reduction; budget for it (dropped automatically for f32 streaming).
    f32_work = Nb * _round_up(C, 8) * _round_up(HW, 128) * 4 if itemsize < 4 else 0
    needed = 4 * block_vmem + 2 * param_vmem + f32_work + (4 << 20)
    vmem_limit = int(min(max(needed, 32 << 20), budget))
    # TODO(synk): if a single double-buffered (C, HW) slab cannot fit in VMEM
    # (very large C*H*W), fall back to a two-pass design (pooling kernel +
    # spatially tiled scale kernel); not needed at typical SE-block shapes.

    kernel = functools.partial(_channel_attn_kernel, inv_hw=1.0 / float(HW))

    out = pl.pallas_call(
        kernel,
        out_shape=jax.ShapeDtypeStruct((N, C, HW), x.dtype),
        grid_spec=pltpu.PrefetchScalarGridSpec(
            num_scalar_prefetch=0,
            grid=(N // Nb,),
            in_specs=[
                pl.BlockSpec((Nb, C, HW), lambda n: (n, 0, 0)),
                pl.BlockSpec((C, Cr), lambda n: (0, 0)),
                pl.BlockSpec((1, Cr), lambda n: (0, 0)),
                pl.BlockSpec((Cr, C), lambda n: (0, 0)),
                pl.BlockSpec((1, C), lambda n: (0, 0)),
            ],
            out_specs=pl.BlockSpec((Nb, C, HW), lambda n: (n, 0, 0)),
        ),
        compiler_params=pltpu.CompilerParams(
            dimension_semantics=("parallel",),
            vmem_limit_bytes=vmem_limit),
    )(x, w1t, b1r, w2t, b2r)

    return out.reshape(N, C, H, W)


def reference_channel_attn(x, w1, b1, w2, b2):
    # Pure-JAX reference matching the PyTorch forward.
    pooled = jnp.mean(x, axis=(2, 3))                         # (N, C)
    y1 = jnp.maximum(pooled @ w1.T + b1, 0.0)                 # (N, Cr)
    y2 = jax.nn.sigmoid(y1 @ w2.T + b2)                       # (N, C)
    return x * y2[:, :, None, None]


if __name__ == "__main__":
    key = jax.random.PRNGKey(0)
    kx, k1, k2, k3, k4, kx2, kx3 = jax.random.split(key, 7)

    # Shapes consistent with the module: channels divisible by reduction=8.
    N, C, H, W = 2, 16, 16, 16
    reduction = 8
    Cr = C // reduction

    x = jax.random.normal(kx, (N, C, H, W), dtype=jnp.float32)
    w1 = jax.random.normal(k1, (Cr, C), dtype=jnp.float32) * 0.1   # Conv2d(C, C//r, 1)
    b1 = jax.random.normal(k2, (Cr,), dtype=jnp.float32) * 0.1
    w2 = jax.random.normal(k3, (C, Cr), dtype=jnp.float32) * 0.1   # Conv2d(C//r, C, 1)
    b2 = jax.random.normal(k4, (C,), dtype=jnp.float32) * 0.1

    # Case 1: lane-aligned spatial (16x16 -> HW=256), f32 streaming.
    out = jax.block_until_ready(channel_attn(x, w1, b1, w2, b2))
    ref = reference_channel_attn(x, w1, b1, w2, b2)
    assert out.shape == (N, C, H, W)
    assert jnp.allclose(out, ref, atol=1e-5, rtol=1e-5), "f32 mismatch vs reference"

    # Case 2: non-128-multiple spatial (14x14 -> HW=196), no wrapper padding.
    x2 = jax.random.normal(kx2, (N, C, 14, 14), dtype=jnp.float32)
    out2 = jax.block_until_ready(channel_attn(x2, w1, b1, w2, b2))
    ref2 = reference_channel_attn(x2, w1, b1, w2, b2)
    assert jnp.allclose(out2, ref2, atol=1e-5, rtol=1e-5), "unaligned-HW mismatch vs reference"

    # Case 3: bf16 streaming (half the HBM traffic), f32 pooling/MLP inside.
    xb = x.astype(jnp.bfloat16)
    out3 = jax.block_until_ready(channel_attn(xb, w1, b1, w2, b2))
    ref3 = reference_channel_attn(xb.astype(jnp.float32), w1, b1, w2, b2)
    assert jnp.allclose(out3.astype(jnp.float32), ref3, atol=5e-2, rtol=5e-2), "bf16 mismatch"

    # Case 4: multi-sample block (Nb > 1) with a small odd spatial (9x9 -> HW=81).
    x4 = jax.random.normal(kx3, (4, C, 9, 9), dtype=jnp.float32)
    out4 = jax.block_until_ready(channel_attn(x4, w1, b1, w2, b2))
    ref4 = reference_channel_attn(x4, w1, b1, w2, b2)
    assert jnp.allclose(out4, ref4, atol=1e-5, rtol=1e-5), "multi-sample mismatch vs reference"

    print("KERNEL_OK")
</pallas_src>

<mosaic_0001>
module attributes {stable_mosaic.version = 11 : i64} {
  func.func @_channel_attn_kernel(%arg0: i32, %arg1: memref<2x16x256xf32, #tpu.memory_space<vmem>>, %arg2: memref<16x2xf32, #tpu.memory_space<vmem>>, %arg3: memref<1x2xf32, #tpu.memory_space<vmem>>, %arg4: memref<2x16xf32, #tpu.memory_space<vmem>>, %arg5: memref<1x16xf32, #tpu.memory_space<vmem>>, %arg6: memref<2x16x256xf32, #tpu.memory_space<vmem>>) attributes {dimension_semantics = [#tpu.dimension_semantics<parallel>], iteration_bounds = array<i64: 1>, scalar_prefetch = 0 : i64, scratch_operands = 0 : i64, tpu.core_type = #tpu.core_type<tc>, window_params = [{transform_indices = @transform_0, window_bounds = array<i64: 2, 16, 256>}, {pipeline_mode = #tpu.pipeline_mode<synchronous>, transform_indices = @transform_1, window_bounds = array<i64: 16, 2>}, {pipeline_mode = #tpu.pipeline_mode<synchronous>, transform_indices = @transform_2, window_bounds = array<i64: 1, 2>}, {pipeline_mode = #tpu.pipeline_mode<synchronous>, transform_indices = @transform_3, window_bounds = array<i64: 2, 16>}, {pipeline_mode = #tpu.pipeline_mode<synchronous>, transform_indices = @transform_4, window_bounds = array<i64: 1, 16>}, {transform_indices = @transform_5, window_bounds = array<i64: 2, 16, 256>}]} {
    %c0 = arith.constant 0 : index
    %c0_0 = arith.constant 0 : index
    %c0_1 = arith.constant 0 : index
    %0 = vector.load %arg1[%c0, %c0_0, %c0_1] : memref<2x16x256xf32, #tpu.memory_space<vmem>>, vector<2x16x256xf32>
    %cst = arith.constant dense<0.000000e+00> : vector<2x16xf32>
    %1 = vector.multi_reduction <add>, %0, %cst [2] : vector<2x16x256xf32> to vector<2x16xf32>
    %cst_2 = arith.constant 3.906250e-03 : f32
    %2 = vector.broadcast %cst_2 : f32 to vector<2x16xf32>
    %3 = arith.mulf %1, %2 : vector<2x16xf32>
    %c0_3 = arith.constant 0 : index
    %c0_4 = arith.constant 0 : index
    %4 = vector.load %arg2[%c0_3, %c0_4] : memref<16x2xf32, #tpu.memory_space<vmem>>, vector<16x2xf32>
    %c0_5 = arith.constant 0 : index
    %c0_6 = arith.constant 0 : index
    %5 = vector.load %arg3[%c0_5, %c0_6] : memref<1x2xf32, #tpu.memory_space<vmem>>, vector<1x2xf32>
    %c0_7 = arith.constant 0 : index
    %c0_8 = arith.constant 0 : index
    %6 = vector.load %arg4[%c0_7, %c0_8] : memref<2x16xf32, #tpu.memory_space<vmem>>, vector<2x16xf32>
    %c0_9 = arith.constant 0 : index
    %c0_10 = arith.constant 0 : index
    %7 = vector.load %arg5[%c0_9, %c0_10] : memref<1x16xf32, #tpu.memory_space<vmem>>, vector<1x16xf32>
    %cst_11 = arith.constant dense<0.000000e+00> : vector<2x2xf32>
    %8 = tpu.matmul %3, %4, %cst_11 {dimension_numbers = #tpu.dot_dimension_numbers<[1], [0], [0], [1], [0, 0, 1, 1], [], []>} : vector<2x16xf32>, vector<16x2xf32>, vector<2x2xf32> -> vector<2x2xf32>
    %9 = vector.broadcast %5 : vector<1x2xf32> to vector<2x2xf32>
    %10 = arith.addf %8, %9 : vector<2x2xf32>
    %cst_12 = arith.constant 0.000000e+00 : f32
    %11 = vector.broadcast %cst_12 : f32 to vector<2x2xf32>
    %12 = arith.maximumf %10, %11 : vector<2x2xf32>
    %cst_13 = arith.constant dense<0.000000e+00> : vector<2x16xf32>
    %13 = tpu.matmul %12, %6, %cst_13 {dimension_numbers = #tpu.dot_dimension_numbers<[1], [0], [0], [1], [0, 0, 1, 1], [], []>} : vector<2x2xf32>, vector<2x16xf32>, vector<2x16xf32> -> vector<2x16xf32>
    %14 = vector.broadcast %7 : vector<1x16xf32> to vector<2x16xf32>
    %15 = arith.addf %13, %14 : vector<2x16xf32>
    %16 = arith.negf %15 : vector<2x16xf32>
    %17 = math.exp %16 : vector<2x16xf32>
    %cst_14 = arith.constant 1.000000e+00 : f32
    %18 = vector.broadcast %cst_14 : f32 to vector<2x16xf32>
    %19 = arith.addf %18, %17 : vector<2x16xf32>
    %20 = arith.divf %18, %19 : vector<2x16xf32>
    %21 = vector.shape_cast %20 : vector<2x16xf32> to vector<2x16x1xf32>
    %22 = vector.broadcast %21 : vector<2x16x1xf32> to vector<2x16x256xf32>
    %23 = arith.mulf %0, %22 : vector<2x16x256xf32>
    %c0_15 = arith.constant 0 : index
    %c0_16 = arith.constant 0 : index
    %c0_17 = arith.constant 0 : index
    %24 = vector.load %arg6[%c0_15, %c0_16, %c0_17] : memref<2x16x256xf32, #tpu.memory_space<vmem>>, vector<2x16x256xf32>
    tpu.vector_store %arg6[%c0_15, %c0_16, %c0_17], %23 {strides = array<i32>} : memref<2x16x256xf32, #tpu.memory_space<vmem>>, vector<2x16x256xf32>,
    return
  }
  func.func @transform_0(%arg0: i32) -> (i32, i32, i32) {
    %c0_i32 = arith.constant 0 : i32
    %c0_i32_0 = arith.constant 0 : i32
    %c0_i32_1 = arith.constant 0 : i32
    return %arg0, %c0_i32, %c0_i32_0 : i32, i32, i32
  }
  func.func @transform_1(%arg0: i32) -> (i32, i32) {
    %c0_i32 = arith.constant 0 : i32
    %c0_i32_0 = arith.constant 0 : i32
    %c0_i32_1 = arith.constant 0 : i32
    return %c0_i32, %c0_i32_0 : i32, i32
  }
  func.func @transform_2(%arg0: i32) -> (i32, i32) {
    %c0_i32 = arith.constant 0 : i32
    %c0_i32_0 = arith.constant 0 : i32
    %c0_i32_1 = arith.constant 0 : i32
    return %c0_i32, %c0_i32_0 : i32, i32
  }
  func.func @transform_3(%arg0: i32) -> (i32, i32) {
    %c0_i32 = arith.constant 0 : i32
    %c0_i32_0 = arith.constant 0 : i32
    %c0_i32_1 = arith.constant 0 : i32
    return %c0_i32, %c0_i32_0 : i32, i32
  }
  func.func @transform_4(%arg0: i32) -> (i32, i32) {
    %c0_i32 = arith.constant 0 : i32
    %c0_i32_0 = arith.constant 0 : i32
    %c0_i32_1 = arith.constant 0 : i32
    return %c0_i32, %c0_i32_0 : i32, i32
  }
  func.func @transform_5(%arg0: i32) -> (i32, i32, i32) {
    %c0_i32 = arith.constant 0 : i32
    %c0_i32_0 = arith.constant 0 : i32
    %c0_i32_1 = arith.constant 0 : i32
    return %arg0, %c0_i32, %c0_i32_0 : i32, i32, i32
  }
}

</mosaic_0001>

<bundles_post_ra>
// kernel: tpu_custom_call.1
= control target key start
LH: loop header
LB: loop body
LE: loop exit
PB: predicated region body
PF: predicated region fallthrough
CT: control target
= control target key end

     0   :  { %10 = vsyncpa [#allocation3], 0  ;;  %s516_s0 = inlined_call_operand.hbm [shape: f32[2,16,256], index: 0, kind: input, shape index: {}]   ;;  %s517_s1 = inlined_call_operand.vmem [shape: f32[16,2], index: 1, kind: input, shape index: {}]   ;;  %s518_s2 = inlined_call_operand.vmem [shape: f32[1,2], index: 2, kind: input, shape index: {}]   ;;  %s519_s3 = inlined_call_operand.vmem [shape: f32[2,16], index: 3, kind: input, shape index: {}]   ;;  %s520_s4 = inlined_call_operand.vmem [shape: f32[1,16], index: 4, kind: input, shape index: {}]   ;;  %s521_s5 = inlined_call_operand.hbm [shape: f32[2,16,256], index: 5, kind: output, shape index: {}]  }
   0x1   :  { %11 = vsyncpa [#allocation4], 0  ;;  %s402_s18 = smov [#allocation2]   ;;  %s354_s22 = scalar_lea.hbm %s516_s0, 1024 }
   0x2   :  { %s17_s19 = sshll.u32 %s402_s18, 4  ;;  %p355_p0 = scmp.ne.s32.totalorder %s516_s0, %s354_s22  ;;  %s18_s19 = int_to_ptr.vmem [resolvable:$true] %s17_s19 }
   0x3   :  { %p358_p1 = scmp.lt.u32.totalorder %s354_s22, %s516_s0 }
   0x5   :  { %p360_p2 = pnand %p358_p1, %p355_p0 }
   0x7   :  { %363 = shalt.err (!%p360_p2)
}
   0x8   :  { %s364_s27 = scalar_lea.vmem %s18_s19, 1024  ;;  %p369_p4 = scmp.lt.s32.totalorder %s18_s19, %s18_s19 }
   0x9   :  { %p365_p3 = scmp.ne.s32.totalorder %s18_s19, %s364_s27  ;;  %p370_p5 = scmp.lt.s32.totalorder %s364_s27, %s364_s27 }
   0xb   :  { %p371_p6 = por %p370_p5, %p369_p4 }
   0xd   :  { %p372_p7 = pnand %p371_p6, %p365_p3 }
   0xf   :  { %375 = shalt.err (!%p372_p7)
}
  0x10   :  { %s403_s28 = smov 256   ;;  %s404_s29 = smov 16  }
  0x11   :  { %23 = dma.hbm_to_vmem [thread:$0]  %s516_s0, 1024, %s18_s19, [#allocation3], %s403_s28, %s403_s28, %s404_s29  }
  0x12   :  { %398 = dma.done.wait [#allocation3], 1024  }
  0x13   :  { %399 = vsyncadd [#allocation3], 4294966272  ;;  %v454_v0 = vld [vmem:[#allocation2 + $0x20] sm:$0xff]  ;;  %v456_v1 = vld [vmem:[#allocation2 + $0x28] sm:$0xff]  ;;  %v405_v15 = vmov 0.0|0.0   ;;  %vm406_vm0 = vmmov 0   ;;  %v74_v17 = vlaneseq }
  0x14   :  { %v458_v2 = vld [vmem:[#allocation2] sm:$0xff]  ;;  %v49_v3 = vadd.f32 %v456_v1, %v454_v0  ;;  %v462_v4 = vld [vmem:[#allocation2 + $0x8] sm:$0xff]  ;;  %v464_v5 = vld [vmem:[#allocation2 + $0x30] sm:$0xff]  ;;  %340 = vmatprep.subr.bf16.mxu0 %v405_v15  ;;  %v407_v16 = vmov 0.0   ;;  %vm85_vm1 = vcmask 130112   ;;  %vm96_vm2 = vcmask 1041409  }
  0x15   :  { %v466_v6 = vld [vmem:[#allocation2 + $0x38] sm:$0xff]  ;;  %v43_v7 = vadd.f32 %v462_v4, %v458_v2  ;;  %v470_v8 = vld [vmem:[#allocation2 + $0x10] sm:$0xff]  ;;  %v59_v12 = vld [vmem:[%s517_s1] sm:$0xff]  ;;  %332 = vmatprep.mubr.msk.f32.mxu0 %vm406_vm0, %v407_v16  ;;  %335 = vmatprep.subr.mxu1 %v407_v16  ;;  %v75_v18 = vand.u32 127, %v74_v17  ;;  %v77_v19 = vshrl.u32 %v74_v17, 7  ;;  %vm98_vm3 = vcmask 130048  }
  0x16   :  { %v472_v9 = vld [vmem:[#allocation2 + $0x18] sm:$0xff]  ;;  %50 = vadd.xlane.f32.xlu1 %v49_v3  ;;  %v52_v10 = vadd.f32 %v466_v6, %v464_v5  ;;  %v60_v13 = vld [vmem:[%s517_s1 + $0x8] sm:$0xff]  ;;  %337 = vmatprep.mubr.msk.f32.mxu1 %vm406_vm0, %v407_v16  ;;  %v62_v38 = vld [vmem:[%s519_s3] sm:$0x3]  ;;  %vm182_vm4 = vcmask 1041408   ;;  %vm178_vm5 = vcmask 15360  }
  0x17   :  { %44 = vadd.xlane.f32.xlu0 %v43_v7  ;;  %v46_v11 = vadd.f32 %v472_v9, %v470_v8  ;;  %v341_v14 = vpack.c.bf16 %v60_v13, %v59_v12  ;;  %v80_v20 = vadd.s32 4294967288, %v75_v18  ;;  %v78_v23 = vsub.s32 %v75_v18, %v77_v19  ;;  %336 = vmatpush3.msk.msra.mxu1 %vm182_vm4, %v62_v38  ;;  %v317_v39 = vld [vmem:[%s518_s2] ss:$0 sm:$0xff]  ;;  %s408_s2 = smov [#allocation5]  }
  0x18   :  { %v319_v44 = vld [vmem:[%s520_s4] ss:$0 sm:$0xff]  ;;  %v264_v51 = vsub.s32 0, %v77_v19  ;;  %v275_v54 = vsub.s32 1, %v77_v19  ;;  %s305_s3 = sshll.u32 %s408_s2, 4  ;;  %s306_s3 = int_to_ptr.vmem [resolvable:$true] %s305_s3 }
  0x19   :  { %342 = vmatpush3.bf16.msra.mxu0 %v341_v14  ;;  %v83_v25 = vsub.s32 %v80_v20, %v77_v19  ;;  %s376_s4 = scalar_lea.vmem %s306_s3, 1024  ;;  %p381_p9 = scmp.lt.s32.totalorder %s306_s3, %s306_s3 }
  0x1a   :  { %53 = vadd.xlane.f32.xlu1 %v52_v10  ;;  %p377_p8 = scmp.ne.s32.totalorder %s306_s3, %s376_s4  ;;  %p382_p10 = scmp.lt.s32.totalorder %s376_s4, %s376_s4 }
  0x1b   :  { %47 = vadd.xlane.f32.xlu0 %v46_v11 }
  0x1c   :  { %p383_p11 = por %p382_p10, %p381_p9 }
  0x1e   :  { %p384_p12 = pnand %p383_p11, %p377_p8 }
  0xa3   :  { %v51_v21 = vpop.xlane.xlu1 %50 }
  0xa4   :  { %v45_v22 = vpop.xlane.xlu0 %44  ;;  %v57_v24 = vmul.f32 0.00390625, %v51_v21 }
  0xa5   :  { %v55_v26 = vmul.f32 0.00390625, %v45_v22 }
  0xa6   :  { %v90_v31 = vrot.slane %v57_v24, %v78_v23 }
  0xa7   :  { %v54_v27 = vpop.xlane.xlu1 %53  ;;  %v79_v33 = vrot.slane %v55_v26, %v78_v23 }
  0xa8   :  { %v58_v28 = vmul.f32 0.00390625, %v54_v27  ;;  %v48_v29 = vpop.xlane.xlu0 %47 }
  0xa9   :  { %v56_v30 = vmul.f32 0.00390625, %v48_v29 }
  0xaa   :  { %v94_v32 = vrot.slane %v58_v28, %v83_v25 }
  0xab   :  { %v84_v34 = vrot.slane %v56_v30, %v83_v25 }
  0xac   :  { %v95_v35 = vsel %vm85_vm1, %v94_v32, %v90_v31 }
  0xad   :  { %v86_v36 = vsel %vm85_vm1, %v84_v34, %v79_v33 }
  0xae   :  { %v97_v37 = vsel %vm96_vm2, %v95_v35, %v86_v36 }
  0xaf   :  { %333 = vmatmul.mubr.msk.f32.vlgmr.msra.gmra.mrb[0].mxu0 %vm98_vm3, %v97_v37 }
 0x182   :  { %v167_v40 = vpop.f32.mrb[0].mxu0 }
 0x183   :  { %v168_v41 = vadd.f32 %v317_v39, %v167_v40  ;;  %v334_v42 = vpop.f32.mrb[1].mxu0 }
 0x185   :  { %v171_v43 = vmax.f32 %v168_v41, 0.0 }
 0x187   :  { %338 = vmatmul.mubr.msk.f32.vlgmr.msra.gmra.mrb[0].mxu1 %vm178_vm5, %v171_v43 }
 0x25a   :  { %v252_v45 = vpop.f32.mrb[0].mxu1 }
 0x25b   :  { %v253_v46 = vadd.f32 %v319_v44, %v252_v45  ;;  %v339_v47 = vpop.f32.mrb[1].mxu1 }
 0x25d   :  { %v322_v48 = vmul.f32 -1.442695, %v253_v46 }
 0x25f   :  { %350 = vpow2.f32 %v322_v48 }
 0x269   :  { %v351_v49 = vpop.eup %350 }
 0x26a   :  { %v259_v50 = vadd.f32 1.0, %v351_v49 }
 0x26c   :  { %352 = vrcp.f32 %v259_v50 }
 0x276   :  { %v353_v52 = vpop.eup %352 }
 0x277   :  { %v265_v53 = vrot.slane %v353_v52, %v264_v51  ;;  %v276_v55 = vrot.slane %v353_v52, %v275_v54 }
 0x279   :  { %271 = vbcast.lane.b32.xlu1 %v265_v53, 264  ;;  %267 = vbcast.lane.b32.xlu0 %v265_v53, 256 }
 0x27d   :  { %278 = vbcast.lane.b32.xlu1 %v276_v55, 256 }
 0x281   :  { %282 = vbcast.lane.b32.xlu1 %v276_v55, 264 }
 0x2eb   :  { %v272_v56 = vpop.permute.xlu1 %271  ;;  %v268_v57 = vpop.permute.xlu0 %267 }
 0x2ec   :  { %v286_v58 = vmul.f32 %v272_v56, %v470_v8  ;;  %v287_v59 = vmul.f32 %v272_v56, %v472_v9  ;;  %v284_v60 = vmul.f32 %v268_v57, %v458_v2  ;;  %v285_v61 = vmul.f32 %v268_v57, %v462_v4 }
 0x2ee   :  { %294 = vst [vmem:[#allocation5 + $0x10] sm:$0xff] %v286_v58  ;;  %295 = vst [vmem:[#allocation5 + $0x18] sm:$0xff] %v287_v59 }
 0x2ef   :  { %292 = vst [vmem:[#allocation5] sm:$0xff] %v284_v60  ;;  %293 = vst [vmem:[#allocation5 + $0x8] sm:$0xff] %v285_v61  ;;  %v279_v62 = vpop.permute.xlu1 %278 }
 0x2f0   :  { %v288_v63 = vmul.f32 %v279_v62, %v454_v0  ;;  %v289_v3 = vmul.f32 %v279_v62, %v456_v1 }
 0x2f2   :  { %296 = vst [vmem:[#allocation5 + $0x20] sm:$0xff] %v288_v63  ;;  %297 = vst [vmem:[#allocation5 + $0x28] sm:$0xff] %v289_v3 }
 0x2f3   :  { %v283_v7 = vpop.permute.xlu1 %282 }
 0x2f4   :  { %v290_v8 = vmul.f32 %v283_v7, %v464_v5  ;;  %v291_v2 = vmul.f32 %v283_v7, %v466_v6 }
 0x2f6   :  { %298 = vst [vmem:[#allocation5 + $0x30] sm:$0xff] %v290_v8  ;;  %299 = vst [vmem:[#allocation5 + $0x38] sm:$0xff] %v291_v2 }
 0x2f7   :  { %387 = shalt.err (!%p384_p12)
}
 0x2f8   :  { %s388_s17 = scalar_lea.hbm %s521_s5, 1024 }
 0x2f9   :  { %p389_p13 = scmp.ne.s32.totalorder %s521_s5, %s388_s17  ;;  %p392_p0 = scmp.lt.u32.totalorder %s388_s17, %s521_s5 }
 0x2fb   :  { %p394_p1 = pnand %p392_p0, %p389_p13 }
 0x2fd   :  { %397 = shalt.err (!%p394_p1)
}
 0x2fe   :  { %311 = dma.vmem_to_hbm [thread:$0]  %s306_s3, 1024, %s521_s5, [#allocation4], %s403_s28, %s403_s28, %s404_s29  }
 0x2ff   :  { %400 = dma.done.wait [#allocation4], 1024  }
 0x300   :  { %401 = vsyncadd [#allocation4], 4294966272 }
 0x301   :  { %315 = vsyncpa [#allocation3], 1 }
 0x302   :  { %316 = vsyncpa [#allocation4], 1 }

</bundles_post_ra>
